<compile_context>
chip_gen: v7x
topology: tpu7x:2x2x1
jax: 0.10.0
libtpu: 0.0.40
codegen_flags: <defaults>
</compile_context>

<pallas_src>
import jax
import jax.numpy as jnp
import numpy as np
from jax import lax
from jax.experimental import pallas as pl
from jax.experimental.pallas import tpu as pltpu

# ---- fixed module configuration -------------------------------------------
NUM_SEMANTICS = 8
OUT_SEMANTICS = NUM_SEMANTICS          # things_stuff=False
NUM_THINGS = 3
C_INS = 1 + 2 + 1 + NUM_THINGS         # center + offset(2) + edge + density
C_TOTAL = OUT_SEMANTICS + C_INS        # = 15
C_COND = OUT_SEMANTICS + NUM_THINGS    # merged cond vector length = 11
FILTER_COND = True
EPS = 1e-6

N, H, W = 2, 16, 16
HW = H * W


def assisted_activation_kernel(x_ref, cond_ref, out_ref):
    # x_ref:   (N, C_TOTAL, HW)   channel axis on sublanes, flattened spatial on lanes
    # cond_ref:(N, C_COND, 1)     [sem_cond | ins_cond], broadcasts over lanes
    hw = jnp.float32(x_ref.shape[-1])
    out_dtype = out_ref.dtype

    cond = cond_ref[...].astype(jnp.float32)                     # (N, 11, 1)
    sem_cond = cond[:, :OUT_SEMANTICS, :]                        # (N, 8, 1)
    ins_cond = cond[:, OUT_SEMANTICS:, :]                        # (N, 3, 1)

    # ---------------- semantic branch: cond_sem_activation ----------------
    # aligned (sublane-tile) slab load
    sem = x_ref[:, :OUT_SEMANTICS, :].astype(jnp.float32)        # (N, 8, HW)
    exp_s = jnp.exp(sem - jnp.max(sem, axis=-1, keepdims=True))  # (N, 8, HW)
    row_sum = jnp.sum(exp_s, axis=-1, keepdims=True)             # (N, 8, 1)

    c = sem_cond
    if FILTER_COND:
        c = jnp.where(c < 1.0 / hw, 0.0, c)                      # filter_sem_cond
        # NOTE: if every cond entry is filtered, sum==0 -> NaN (matches the
        #       PyTorch reference; no guard added to preserve semantics).
        c = c / jnp.sum(c, axis=1, keepdims=True)

    # fold softmax normalization into a per-channel scale:
    #   softmax * cond * HW == exp_s * (cond * HW / row_sum)
    scale = c * hw / row_sum                                     # (N, 8, 1)
    sem_mask = exp_s * scale + EPS                               # (N, 8, HW)
    inv_denom = pl.reciprocal(jnp.sum(sem_mask, axis=1, keepdims=True))  # exact (1e-5 tol)
    sem_out = sem_mask * inv_denom                               # (N, 8, HW)

    # ---------------- instance branch: cond_ins_activation ----------------
    ins = x_ref[:, OUT_SEMANTICS:, :].astype(jnp.float32)        # aligned (N, 7, HW)

    # channels 0..3: center / offset_x / offset_y / edge -> one fused sigmoid pass
    #   sigmoid(x) for rows {0,3}; tanh(x) = 2*sigmoid(2x) - 1 for rows {1,2}
    ins4 = ins[:, :4, :]                                         # (N, 4, HW)
    row = lax.broadcasted_iota(jnp.int32, ins4.shape, 1)
    is_off = (row == 1) | (row == 2)
    pre = jnp.where(is_off, 2.0, 1.0)
    act4 = jax.nn.sigmoid(ins4 * pre) * pre + jnp.where(is_off, -1.0, 0.0)

    # channels 4..6: density -> folded spatial softmax * ins_cond
    d = ins[:, 4:, :]                                            # (N, 3, HW)
    exp_d = jnp.exp(d - jnp.max(d, axis=-1, keepdims=True))
    d_scale = ins_cond / jnp.sum(exp_d, axis=-1, keepdims=True)  # (N, 3, 1)
    dens = exp_d * d_scale                                       # (N, 3, HW)

    # ---------------- two sublane-tile-aligned stores -----------------------
    out_ref[:, :OUT_SEMANTICS, :] = sem_out.astype(out_dtype)
    out_ref[:, OUT_SEMANTICS:, :] = jnp.concatenate(
        [act4, dens], axis=1).astype(out_dtype)                  # (N, 7, HW) slab


def assisted_activation(x_nchw, sem_cond, ins_cond):
    """x_nchw: (N, C_TOTAL, H, W); sem_cond: (N, OUT_SEMANTICS); ins_cond: (N, NUM_THINGS)."""
    n, c, h, w = x_nchw.shape
    hw = h * w
    x = x_nchw.reshape(n, c, hw)
    cond = jnp.concatenate([sem_cond, ins_cond], axis=1).reshape(n, C_COND, 1)

    out = pl.pallas_call(
        assisted_activation_kernel,
        out_shape=jax.ShapeDtypeStruct((n, c, hw), x_nchw.dtype),
        grid_spec=pltpu.PrefetchScalarGridSpec(
            num_scalar_prefetch=0,
            grid=(1,),                       # whole problem in one step (~60 KiB total)
            in_specs=[
                pl.BlockSpec((n, c, hw), lambda i: (0, 0, 0)),
                pl.BlockSpec((n, C_COND, 1), lambda i: (0, 0, 0)),
            ],
            out_specs=pl.BlockSpec((n, c, hw), lambda i: (0, 0, 0)),
        ),
        compiler_params=pltpu.CompilerParams(dimension_semantics=("arbitrary",)),
    )(x, cond)
    return out.reshape(n, c, h, w)


# ---- pure-JAX reference (mirrors the PyTorch forward) ----------------------
def reference(x, sem_cond, ins_cond):
    sem = x[:, :OUT_SEMANTICS]
    ins = x[:, OUT_SEMANTICS:]
    n, cs, h, w = sem.shape
    cond = sem_cond
    if FILTER_COND:
        cond = jnp.where(cond < 1.0 / (h * w), 0.0, cond)
        cond = cond / jnp.sum(cond, axis=1, keepdims=True)
    s = jax.nn.softmax(sem.reshape(n, cs, -1), axis=2).reshape(sem.shape)
    mask = s * cond[:, :, None, None] * h * w
    sem_out = (mask + EPS) / jnp.sum(mask + EPS, axis=1, keepdims=True)

    center = jax.nn.sigmoid(ins[:, 0:1])
    offset = jnp.tanh(ins[:, 1:3])
    edge = jax.nn.sigmoid(ins[:, 3:4])
    dens = jax.nn.softmax(
        ins[:, 4:4 + NUM_THINGS].reshape(n, NUM_THINGS, -1), axis=2
    ).reshape(n, NUM_THINGS, h, w)
    dens = dens * ins_cond[:, :, None, None]
    return jnp.concatenate([sem_out, center, offset, edge, dens], axis=1)


if __name__ == "__main__":
    key = jax.random.PRNGKey(0)
    k1, k2, k3 = jax.random.split(key, 3)

    x = jax.random.normal(k1, (N, C_TOTAL, H, W), dtype=jnp.float32)
    sem_cond = jax.random.uniform(k2, (N, OUT_SEMANTICS), jnp.float32, 0.1, 1.0)
    sem_cond = sem_cond / jnp.sum(sem_cond, axis=1, keepdims=True)
    ins_cond = jax.random.uniform(k3, (N, NUM_THINGS), jnp.float32, 0.0, 1.0)

    out = assisted_activation(x, sem_cond, ins_cond)
    out = jax.block_until_ready(out)

    ref = reference(x, sem_cond, ins_cond)
    np.testing.assert_allclose(np.asarray(out), np.asarray(ref), rtol=1e-5, atol=1e-5)

    print("KERNEL_OK")
</pallas_src>

<mosaic_0001>
module attributes {stable_mosaic.version = 11 : i64} {
  func.func @assisted_activation_kernel(%arg0: i32, %arg1: memref<2x15x256xf32, #tpu.memory_space<vmem>>, %arg2: memref<2x11x1xf32, #tpu.memory_space<vmem>>, %arg3: memref<2x15x256xf32, #tpu.memory_space<vmem>>) attributes {dimension_semantics = [#tpu.dimension_semantics<arbitrary>], iteration_bounds = array<i64: 1>, scalar_prefetch = 0 : i64, scratch_operands = 0 : i64, tpu.core_type = #tpu.core_type<tc>, window_params = [{pipeline_mode = #tpu.pipeline_mode<synchronous>, transform_indices = @transform_0, window_bounds = array<i64: 2, 15, 256>}, {pipeline_mode = #tpu.pipeline_mode<synchronous>, transform_indices = @transform_1, window_bounds = array<i64: 2, 11, 1>}, {pipeline_mode = #tpu.pipeline_mode<synchronous>, transform_indices = @transform_2, window_bounds = array<i64: 2, 15, 256>}]} {
    %c0 = arith.constant 0 : index
    %c0_0 = arith.constant 0 : index
    %c0_1 = arith.constant 0 : index
    %0 = vector.load %arg2[%c0, %c0_0, %c0_1] : memref<2x11x1xf32, #tpu.memory_space<vmem>>, vector<2x11x1xf32>
    %1 = vector.extract_strided_slice %0 {offsets = [0, 0, 0], sizes = [2, 8, 1], strides = [1, 1, 1]} : vector<2x11x1xf32> to vector<2x8x1xf32>
    %2 = vector.extract_strided_slice %0 {offsets = [0, 8, 0], sizes = [2, 3, 1], strides = [1, 1, 1]} : vector<2x11x1xf32> to vector<2x3x1xf32>
    %c0_2 = arith.constant 0 : index
    %c0_3 = arith.constant 0 : index
    %c0_4 = arith.constant 0 : index
    %3 = vector.load %arg1[%c0_2, %c0_3, %c0_4] : memref<2x15x256xf32, #tpu.memory_space<vmem>>, vector<2x8x256xf32>
    %cst = arith.constant dense<0xFF800000> : vector<2x8xf32>
    %4 = vector.multi_reduction <maximumf>, %3, %cst [2] : vector<2x8x256xf32> to vector<2x8xf32>
    %5 = vector.shape_cast %4 : vector<2x8xf32> to vector<2x8x1xf32>
    %6 = vector.broadcast %5 : vector<2x8x1xf32> to vector<2x8x256xf32>
    %7 = arith.subf %3, %6 : vector<2x8x256xf32>
    %8 = math.exp %7 : vector<2x8x256xf32>
    %cst_5 = arith.constant dense<0.000000e+00> : vector<2x8xf32>
    %9 = vector.multi_reduction <add>, %8, %cst_5 [2] : vector<2x8x256xf32> to vector<2x8xf32>
    %10 = vector.shape_cast %9 : vector<2x8xf32> to vector<2x8x1xf32>
    %cst_6 = arith.constant 1.000000e+00 : f32
    %cst_7 = arith.constant 2.560000e+02 : f32
    %11 = arith.divf %cst_6, %cst_7 : f32
    %12 = vector.broadcast %11 : f32 to vector<2x8x1xf32>
    %13 = arith.cmpf olt, %1, %12 : vector<2x8x1xf32>
    %cst_8 = arith.constant 0.000000e+00 : f32
    %14 = vector.broadcast %cst_8 : f32 to vector<2x8x1xf32>
    %15 = arith.select %13, %14, %1 : vector<2x8x1xi1>, vector<2x8x1xf32>
    %cst_9 = arith.constant dense<0.000000e+00> : vector<2x1xf32>
    %16 = vector.multi_reduction <add>, %15, %cst_9 [1] : vector<2x8x1xf32> to vector<2x1xf32>
    %17 = vector.shape_cast %16 : vector<2x1xf32> to vector<2x1x1xf32>
    %18 = vector.broadcast %17 : vector<2x1x1xf32> to vector<2x8x1xf32>
    %19 = arith.divf %15, %18 : vector<2x8x1xf32>
    %cst_10 = arith.constant 2.560000e+02 : f32
    %20 = vector.broadcast %cst_10 : f32 to vector<2x8x1xf32>
    %21 = arith.mulf %19, %20 : vector<2x8x1xf32>
    %22 = arith.divf %21, %10 : vector<2x8x1xf32>
    %23 = vector.broadcast %22 : vector<2x8x1xf32> to vector<2x8x256xf32>
    %24 = arith.mulf %8, %23 : vector<2x8x256xf32>
    %cst_11 = arith.constant 9.99999997E-7 : f32
    %25 = vector.broadcast %cst_11 : f32 to vector<2x8x256xf32>
    %26 = arith.addf %24, %25 : vector<2x8x256xf32>
    %cst_12 = arith.constant dense<0.000000e+00> : vector<2x256xf32>
    %27 = vector.multi_reduction <add>, %26, %cst_12 [1] : vector<2x8x256xf32> to vector<2x256xf32>
    %28 = vector.shape_cast %27 : vector<2x256xf32> to vector<2x1x256xf32>
    %29 = tpu.reciprocal %28 : vector<2x1x256xf32> -> vector<2x1x256xf32>
    %30 = vector.broadcast %29 : vector<2x1x256xf32> to vector<2x8x256xf32>
    %31 = arith.mulf %26, %30 : vector<2x8x256xf32>
    %c0_13 = arith.constant 0 : index
    %c8 = arith.constant 8 : index
    %c0_14 = arith.constant 0 : index
    %32 = vector.load %arg1[%c0_13, %c8, %c0_14] : memref<2x15x256xf32, #tpu.memory_space<vmem>>, vector<2x7x256xf32>
    %33 = vector.extract_strided_slice %32 {offsets = [0, 0, 0], sizes = [2, 4, 256], strides = [1, 1, 1]} : vector<2x7x256xf32> to vector<2x4x256xf32>
    %34 = tpu.iota {dimensions = array<i32: 1>} : vector<2x4x256xi32>
    %c1_i32 = arith.constant 1 : i32
    %35 = vector.broadcast %c1_i32 : i32 to vector<2x4x256xi32>
    %36 = arith.cmpi eq, %34, %35 : vector<2x4x256xi32>
    %c2_i32 = arith.constant 2 : i32
    %37 = vector.broadcast %c2_i32 : i32 to vector<2x4x256xi32>
    %38 = arith.cmpi eq, %34, %37 : vector<2x4x256xi32>
    %39 = arith.ori %36, %38 : vector<2x4x256xi1>
    %cst_15 = arith.constant 2.000000e+00 : f32
    %cst_16 = arith.constant 1.000000e+00 : f32
    %40 = vector.broadcast %cst_15 : f32 to vector<2x4x256xf32>
    %41 = vector.broadcast %cst_16 : f32 to vector<2x4x256xf32>
    %42 = arith.select %39, %40, %41 : vector<2x4x256xi1>, vector<2x4x256xf32>
    %43 = arith.mulf %33, %42 : vector<2x4x256xf32>
    %44 = arith.negf %43 : vector<2x4x256xf32>
    %45 = math.exp %44 : vector<2x4x256xf32>
    %cst_17 = arith.constant 1.000000e+00 : f32
    %46 = vector.broadcast %cst_17 : f32 to vector<2x4x256xf32>
    %47 = arith.addf %46, %45 : vector<2x4x256xf32>
    %48 = arith.divf %46, %47 : vector<2x4x256xf32>
    %49 = arith.mulf %48, %42 : vector<2x4x256xf32>
    %cst_18 = arith.constant -1.000000e+00 : f32
    %cst_19 = arith.constant 0.000000e+00 : f32
    %50 = vector.broadcast %cst_18 : f32 to vector<2x4x256xf32>
    %51 = vector.broadcast %cst_19 : f32 to vector<2x4x256xf32>
    %52 = arith.select %39, %50, %51 : vector<2x4x256xi1>, vector<2x4x256xf32>
    %53 = arith.addf %49, %52 : vector<2x4x256xf32>
    %54 = vector.extract_strided_slice %32 {offsets = [0, 4, 0], sizes = [2, 3, 256], strides = [1, 1, 1]} : vector<2x7x256xf32> to vector<2x3x256xf32>
    %cst_20 = arith.constant dense<0xFF800000> : vector<2x3xf32>
    %55 = vector.multi_reduction <maximumf>, %54, %cst_20 [2] : vector<2x3x256xf32> to vector<2x3xf32>
    %56 = vector.shape_cast %55 : vector<2x3xf32> to vector<2x3x1xf32>
    %57 = vector.broadcast %56 : vector<2x3x1xf32> to vector<2x3x256xf32>
    %58 = arith.subf %54, %57 : vector<2x3x256xf32>
    %59 = math.exp %58 : vector<2x3x256xf32>
    %cst_21 = arith.constant dense<0.000000e+00> : vector<2x3xf32>
    %60 = vector.multi_reduction <add>, %59, %cst_21 [2] : vector<2x3x256xf32> to vector<2x3xf32>
    %61 = vector.shape_cast %60 : vector<2x3xf32> to vector<2x3x1xf32>
    %62 = arith.divf %2, %61 : vector<2x3x1xf32>
    %63 = vector.broadcast %62 : vector<2x3x1xf32> to vector<2x3x256xf32>
    %64 = arith.mulf %59, %63 : vector<2x3x256xf32>
    %c0_22 = arith.constant 0 : index
    %c0_23 = arith.constant 0 : index
    %c0_24 = arith.constant 0 : index
    %65 = vector.load %arg3[%c0_22, %c0_23, %c0_24] : memref<2x15x256xf32, #tpu.memory_space<vmem>>, vector<2x8x256xf32>
    tpu.vector_store %arg3[%c0_22, %c0_23, %c0_24], %31 {strides = array<i32>} : memref<2x15x256xf32, #tpu.memory_space<vmem>>, vector<2x8x256xf32>,
    %66 = tpu.concatenate %53, %64 in 1 : vector<2x4x256xf32>, vector<2x3x256xf32> -> vector<2x7x256xf32>
    %c0_25 = arith.constant 0 : index
    %c8_26 = arith.constant 8 : index
    %c0_27 = arith.constant 0 : index
    %67 = vector.load %arg3[%c0_25, %c8_26, %c0_27] : memref<2x15x256xf32, #tpu.memory_space<vmem>>, vector<2x7x256xf32>
    tpu.vector_store %arg3[%c0_25, %c8_26, %c0_27], %66 {strides = array<i32>} : memref<2x15x256xf32, #tpu.memory_space<vmem>>, vector<2x7x256xf32>,
    return
  }
  func.func @transform_0(%arg0: i32) -> (i32, i32, i32) {
    %c0_i32 = arith.constant 0 : i32
    %c0_i32_0 = arith.constant 0 : i32
    %c0_i32_1 = arith.constant 0 : i32
    %c0_i32_2 = arith.constant 0 : i32
    return %c0_i32, %c0_i32_0, %c0_i32_1 : i32, i32, i32
  }
  func.func @transform_1(%arg0: i32) -> (i32, i32, i32) {
    %c0_i32 = arith.constant 0 : i32
    %c0_i32_0 = arith.constant 0 : i32
    %c0_i32_1 = arith.constant 0 : i32
    %c0_i32_2 = arith.constant 0 : i32
    return %c0_i32, %c0_i32_0, %c0_i32_1 : i32, i32, i32
  }
  func.func @transform_2(%arg0: i32) -> (i32, i32, i32) {
    %c0_i32 = arith.constant 0 : i32
    %c0_i32_0 = arith.constant 0 : i32
    %c0_i32_1 = arith.constant 0 : i32
    %c0_i32_2 = arith.constant 0 : i32
    return %c0_i32, %c0_i32_0, %c0_i32_1 : i32, i32, i32
  }
}

</mosaic_0001>

<bundles_post_ra>
// kernel: tpu_custom_call.1
= control target key start
LH: loop header
LB: loop body
LE: loop exit
PB: predicated region body
PF: predicated region fallthrough
CT: control target
= control target key end

     0   :  { %vm169_vm0 = vcmask 1046532   ;;  %v306_v52 = vmov 0   ;;  %vm47_vm2 = vcmask 7168   ;;  %vm232_vm7 = vcmask 1043456   ;;  %s466_s0 = inlined_call_operand.vmem [shape: f32[2,15,256], index: 0, kind: input, shape index: {}]   ;;  %s467_s1 = inlined_call_operand.vmem [shape: f32[2,11,1], index: 1, kind: input, shape index: {}]   ;;  %s468_s2 = inlined_call_operand.vmem [shape: f32[2,15,256], index: 2, kind: output, shape index: {}]  }
   0x1   :  { %v15_v0 = vld [vmem:[%s466_s0] sm:$0xff]  ;;  %v16_v1 = vld [vmem:[%s466_s0 + $0x8] sm:$0xff]  ;;  %v339_v5 = vld [vmem:[%s466_s0 + $0x10] sm:$0x7f]  ;;  %252 = vset.pattern.permute.xlu0 %v306_v52  ;;  %253 = vset.pattern.permute.xlu1 %v306_v52 }
   0x2   :  { %v17_v2 = vld [vmem:[%s466_s0 + $0x20] sm:$0xff]  ;;  %v19_v3 = vmax.f32 %v15_v0, %v16_v1  ;;  %v18_v4 = vld [vmem:[%s466_s0 + $0x28] sm:$0xff]  ;;  %v344_v6 = vld [vmem:[%s466_s0 + $0x18] sm:$0x7f]  ;;  %v170_v7 = vsel %vm169_vm0, %v339_v5, -inf }
   0x3   :  { %v171_v8 = vsel %vm169_vm0, %v344_v6, -inf  ;;  %v353_v9 = vld [vmem:[%s466_s0 + $0x30] sm:$0x7f]  ;;  %v358_v10 = vld [vmem:[%s466_s0 + $0x38] sm:$0x7f]  ;;  %v22_v11 = vmax.f32 %v17_v2, %v18_v4  ;;  %v11_v53 = vld [vmem:[%s467_s1] sm:$0xff] }
   0x4   :  { %20 = vmax.xlane.f32.xlu0 %v19_v3  ;;  %v172_v12 = vmax.f32 %v170_v7, %v171_v8  ;;  %v175_v13 = vsel %vm169_vm0, %v353_v9, -inf  ;;  %v176_v14 = vsel %vm169_vm0, %v358_v10, -inf  ;;  %vm43_vm1 = vcmp.lt.f32.partialorder %v11_v53, 0.00390625  ;;  %v13_v54 = vld [vmem:[%s467_s1 + $0x10] sm:$0xff] }
   0x5   :  { %v177_v15 = vmax.f32 %v175_v13, %v176_v14  ;;  %v45_v55 = vsel %vm43_vm1, 0.0, %v11_v53  ;;  %vm44_vm3 = vcmp.lt.f32.partialorder %v13_v54, 0.00390625 }
   0x6   :  { %173 = vmax.xlane.f32.xlu1 %v172_v12  ;;  %v48_v56 = vsel %vm47_vm2, %v45_v55, 0.0  ;;  %v46_v57 = vsel %vm44_vm3, 0.0, %v13_v54 }
   0x7   :  { %v49_v58 = vrot.slane %v48_v56, 4  ;;  %v55_v59 = vsel %vm47_vm2, %v46_v57, 0.0 }
   0x8   :  { %23 = vmax.xlane.f32.xlu0 %v22_v11  ;;  %v56_v61 = vrot.slane %v55_v59, 4 }
   0x9   :  { %v50_v60 = vadd.f32 %v49_v58, %v48_v56 }
   0xa   :  { %178 = vmax.xlane.f32.xlu1 %v177_v15  ;;  %v57_v63 = vadd.f32 %v56_v61, %v55_v59 }
   0xb   :  { %v51_v62 = vrot.slane %v50_v60, 2 }
  0x91   :  { %v21_v16 = vpop.xlane.xlu0 %20 }
  0x92   :  { %v25_v17 = vsub.f32 %v15_v0, %v21_v16  ;;  %v26_v18 = vsub.f32 %v16_v1, %v21_v16  ;;  %v52_v0 = vadd.f32 %v51_v62, %v50_v60  ;;  %v58_v1 = vrot.slane %v57_v63, 2 }
  0x93   :  { %v174_v19 = vpop.xlane.xlu1 %173 }
  0x94   :  { %v29_v20 = vmul.f32 1.442695, %v25_v17  ;;  %v31_v21 = vmul.f32 1.442695, %v26_v18  ;;  %v180_v22 = vsub.f32 %v339_v5, %v174_v19  ;;  %v181_v23 = vsub.f32 %v344_v6, %v174_v19 }
  0x95   :  { %v24_v24 = vpop.xlane.xlu0 %23  ;;  %v59_v3 = vadd.f32 %v58_v1, %v57_v63 }
  0x96   :  { %254 = vpow2.f32 %v29_v20  ;;  %v27_v25 = vsub.f32 %v17_v2, %v24_v24  ;;  %v28_v26 = vsub.f32 %v18_v4, %v24_v24  ;;  %v184_v27 = vmul.f32 1.442695, %v180_v22 }
  0x97   :  { %256 = vpow2.f32 %v31_v21  ;;  %v186_v28 = vmul.f32 1.442695, %v181_v23  ;;  %v179_v29 = vpop.xlane.xlu1 %178  ;;  %v53_v2 = vrot.slane %v52_v0, 1  ;;  %v60_v7 = vrot.slane %v59_v3, 1 }
  0x98   :  { %v33_v30 = vmul.f32 1.442695, %v27_v25  ;;  %v35_v31 = vmul.f32 1.442695, %v28_v26  ;;  %258 = vpow2.f32 %v184_v27  ;;  %v182_v32 = vsub.f32 %v353_v9, %v179_v29  ;;  %v12_v26 = vld [vmem:[%s467_s1 + $0x8] sm:$0x7] }
  0x99   :  { %260 = vpow2.f32 %v186_v28  ;;  %v183_v33 = vsub.f32 %v358_v10, %v179_v29  ;;  %v54_v4 = vadd.f32 %v53_v2, %v52_v0  ;;  %v61_v8 = vadd.f32 %v60_v7, %v59_v3 }
  0x9a   :  { %262 = vpow2.f32 %v33_v30  ;;  %v188_v34 = vmul.f32 1.442695, %v182_v32  ;;  %v14_v30 = vld [vmem:[%s467_s1 + $0x18] sm:$0x7]  ;;  %v308_v3 = vmov 0.0  }
  0x9b   :  { %264 = vpow2.f32 %v35_v31  ;;  %v190_v35 = vmul.f32 1.442695, %v183_v33  ;;  %v126_v33 = vlaneseq }
  0x9c   :  { %266 = vpow2.f32 %v188_v34 }
  0x9d   :  { %268 = vpow2.f32 %v190_v35  ;;  %v127_v34 = vshrl.u32 %v126_v33, 7 }
  0x9e   :  { %270 = vrcp.f32 %v54_v4 }
  0x9f   :  { %272 = vrcp.f32 %v61_v8  ;;  %vm128_vm4 = vcmp.eq.s32.totalorder %v127_v34, 1  ;;  %vm129_vm5 = vcmp.eq.s32.totalorder %v127_v34, 2 }
  0xa0   :  { %v368_v36 = vpop.eup %254  ;;  %vm408_vm6 = vmor %vm128_vm4, %vm129_vm5 }
  0xa1   :  { %v370_v37 = vpop.eup %256  ;;  %v164_v4 = vsel %vm408_vm6, -1.0, %v308_v3 }
  0xa2   :  { %v372_v38 = vpop.eup %258  ;;  %v37_v39 = vadd.f32 %v370_v37, %v368_v36 }
  0xa3   :  { %v376_v40 = vpop.eup %260  ;;  %v192_v41 = vsel %vm169_vm0, %v372_v38, 0.0 }
  0xa4   :  { %v380_v42 = vpop.eup %262  ;;  %38 = vadd.xlane.f32.xlu0 %v37_v39  ;;  %v193_v43 = vsel %vm169_vm0, %v376_v40, 0.0  ;;  %v307_v39 = vmov 1.0  }
  0xa5   :  { %v384_v44 = vpop.eup %264  ;;  %v194_v45 = vadd.f32 %v193_v43, %v192_v41  ;;  %v131_v41 = vsel %vm408_vm6, 2.0, %v307_v39 }
  0xa6   :  { %v386_v46 = vpop.eup %266  ;;  %v40_v47 = vadd.f32 %v384_v44, %v380_v42  ;;  %v132_v43 = vmul.f32 %v131_v41, %v339_v5 }
  0xa7   :  { %v390_v48 = vpop.eup %268  ;;  %v197_v49 = vsel %vm169_vm0, %v386_v46, 0.0 }
  0xa8   :  { %41 = vadd.xlane.f32.xlu1 %v40_v47  ;;  %195 = vadd.xlane.f32.xlu0 %v194_v45  ;;  %v198_v50 = vsel %vm169_vm0, %v390_v48, 0.0  ;;  %v271_v12 = vpop.eup %270  ;;  %v133_v45 = vmul.f32 %v131_v41, %v344_v6  ;;  %v245_v47 = vmul.f32 -1.442695, %v132_v43 }
  0xa9   :  { %v199_v51 = vadd.f32 %v198_v50, %v197_v49  ;;  %v63_v15 = vmul.f32 %v271_v12, %v45_v55  ;;  %v273_v16 = vpop.eup %272  ;;  %v134_v49 = vmul.f32 %v131_v41, %v353_v9 }
  0xaa   :  { %v65_v20 = vmul.f32 %v273_v16, %v46_v57  ;;  %v246_v50 = vmul.f32 -1.442695, %v133_v45 }
  0xab   :  { %v66_v19 = vmul.f32 256.0, %v63_v15  ;;  %v247_v52 = vmul.f32 -1.442695, %v134_v49 }
  0xac   :  { %200 = vadd.xlane.f32.xlu1 %v199_v51  ;;  %v67_v24 = vmul.f32 256.0, %v65_v20  ;;  %v135_v51 = vmul.f32 %v131_v41, %v358_v10 }
  0xae   :  { %v248_v53 = vmul.f32 -1.442695, %v135_v51 }
 0x131   :  { %v39_v11 = vpop.xlane.xlu0 %38 }
 0x132   :  { %274 = vrcp.f32 %v39_v11 }
 0x135   :  { %v42_v13 = vpop.xlane.xlu1 %41  ;;  %v196_v14 = vpop.xlane.xlu0 %195 }
 0x136   :  { %276 = vrcp.f32 %v42_v13  ;;  %v204_v17 = vrot.slane %v196_v14, 4 }
 0x138   :  { %278 = vrcp.f32 %v204_v17 }
 0x139   :  { %v201_v18 = vpop.xlane.xlu1 %200 }
 0x13a   :  { %v205_v21 = vrot.slane %v201_v18, 4 }
 0x13c   :  { %v275_v22 = vpop.eup %274  ;;  %280 = vrcp.f32 %v205_v21 }
 0x13d   :  { %v69_v23 = vmul.f32 %v275_v22, %v66_v19  ;;  %282 = vpow2.f32 %v245_v47 }
 0x13e   :  { %284 = vpow2.f32 %v246_v50 }
 0x13f   :  { %74 = vperm.xlu0 %252, %v69_v23   ;;  %286 = vpow2.f32 %v247_v52 }
 0x140   :  { %v277_v25 = vpop.eup %276  ;;  %288 = vpow2.f32 %v248_v53 }
 0x141   :  { %v71_v27 = vmul.f32 %v277_v25, %v67_v24 }
 0x142   :  { %v279_v28 = vpop.eup %278 }
 0x143   :  { %79 = vperm.xlu1 %253, %v71_v27   ;;  %v209_v29 = vmul.f32 %v279_v28, %v12_v26 }
 0x146   :  { %v281_v31 = vpop.eup %280 }
 0x147   :  { %214 = vperm.xlu1 %253, %v209_v29   ;;  %v211_v32 = vmul.f32 %v281_v31, %v14_v30  ;;  %v283_v54 = vpop.eup %282 }
 0x148   :  { %v285_v55 = vpop.eup %284  ;;  %v148_v56 = vadd.f32 1.0, %v283_v54 }
 0x149   :  { %v287_v57 = vpop.eup %286  ;;  %v149_v58 = vadd.f32 1.0, %v285_v55 }
 0x14a   :  { %v289_v5 = vpop.eup %288  ;;  %290 = vrcp.f32 %v148_v56  ;;  %v150_v6 = vadd.f32 1.0, %v287_v57 }
 0x14b   :  { %218 = vperm.xlu1 %253, %v211_v32   ;;  %292 = vrcp.f32 %v149_v58  ;;  %v151_v59 = vadd.f32 1.0, %v289_v5 }
 0x14c   :  { %294 = vrcp.f32 %v150_v6 }
 0x14d   :  { %296 = vrcp.f32 %v151_v59 }
 0x154   :  { %v291_v10 = vpop.eup %290 }
 0x155   :  { %v293_v62 = vpop.eup %292  ;;  %v160_v2 = vmul.f32 %v291_v10, %v131_v41 }
 0x156   :  { %v295_v7 = vpop.eup %294  ;;  %v161_v12 = vmul.f32 %v293_v62, %v131_v41 }
 0x157   :  { %v297_v13 = vpop.eup %296  ;;  %v165_v18 = vadd.f32 %v164_v4, %v160_v2  ;;  %v162_v20 = vmul.f32 %v295_v7, %v131_v41 }
 0x158   :  { %v166_v25 = vadd.f32 %v164_v4, %v161_v12  ;;  %v163_v26 = vmul.f32 %v297_v13, %v131_v41 }
 0x159   :  { %v167_v32 = vadd.f32 %v164_v4, %v162_v20 }
 0x15a   :  { %v168_v49 = vadd.f32 %v164_v4, %v163_v26 }
 0x1be   :  { %v75_v9 = vpop.permute.xlu0 %74 }
 0x1bf   :  { %v82_v60 = vmul.f32 %v368_v36, %v75_v9  ;;  %v83_v61 = vmul.f32 %v370_v37, %v75_v9 }
 0x1c1   :  { %v420_v63 = vadd.f32 1e-06, %v82_v60  ;;  %v422_v0 = vadd.f32 1e-06, %v83_v61 }
 0x1c2   :  { %v80_v1 = vpop.permute.xlu1 %79 }
 0x1c3   :  { %v90_v8 = vrot.slane %v420_v63, 4  ;;  %v96_v11 = vrot.slane %v422_v0, 4  ;;  %v84_v36 = vmul.f32 %v380_v42, %v80_v1  ;;  %v85_v37 = vmul.f32 %v384_v44, %v80_v1 }
 0x1c5   :  { %v91_v14 = vadd.f32 %v90_v8, %v420_v63  ;;  %v97_v15 = vadd.f32 %v96_v11, %v422_v0  ;;  %v88_v16 = vadd.f32 1e-06, %v84_v36  ;;  %v89_v17 = vadd.f32 1e-06, %v85_v37 }
 0x1c6   :  { %v215_v19 = vpop.permute.xlu1 %214 }
 0x1c7   :  { %v92_v21 = vrot.slane %v91_v14, 2  ;;  %v98_v22 = vrot.slane %v97_v15, 2  ;;  %v102_v23 = vrot.slane %v88_v16, 4  ;;  %v108_v24 = vrot.slane %v89_v17, 4 }
 0x1c8   :  { %v220_v42 = vrot.slane %v215_v19, 4 }
 0x1c9   :  { %v93_v44 = vadd.f32 %v92_v21, %v91_v14  ;;  %v99_v27 = vadd.f32 %v98_v22, %v97_v15  ;;  %v103_v28 = vadd.f32 %v102_v23, %v88_v16  ;;  %v109_v29 = vadd.f32 %v108_v24, %v89_v17 }
 0x1ca   :  { %v224_v30 = vmul.f32 %v372_v38, %v220_v42  ;;  %v225_v31 = vmul.f32 %v376_v40, %v220_v42  ;;  %v219_v33 = vpop.permute.xlu1 %218 }
 0x1cb   :  { %v94_v34 = vrot.slane %v93_v44, 1  ;;  %v100_v35 = vrot.slane %v99_v27, 1  ;;  %v104_v39 = vrot.slane %v103_v28, 2  ;;  %v110_v43 = vrot.slane %v109_v29, 2 }
 0x1cc   :  { %v233_v45 = vsel %vm232_vm7, %v165_v18, %v224_v30  ;;  %v234_v47 = vsel %vm232_vm7, %v166_v25, %v225_v31  ;;  %v221_v41 = vrot.slane %v219_v33, 4 }
 0x1cd   :  { %v95_v50 = vadd.f32 %v94_v34, %v93_v44  ;;  %v101_v51 = vadd.f32 %v100_v35, %v99_v27  ;;  %v105_v52 = vadd.f32 %v104_v39, %v103_v28  ;;  %v111_v53 = vadd.f32 %v110_v43, %v109_v29  ;;  %237 = vst [vmem:[%s468_s2 + $0x10] sm:$0x7f] %v233_v45 }
 0x1ce   :  { %238 = vst [vmem:[%s468_s2 + $0x18] sm:$0x7f] %v234_v47  ;;  %v226_v38 = vmul.f32 %v386_v46, %v221_v41  ;;  %v227_v40 = vmul.f32 %v390_v48, %v221_v41 }
 0x1cf   :  { %298 = vrcp.f32 %v95_v50  ;;  %v106_v54 = vrot.slane %v105_v52, 1  ;;  %v112_v55 = vrot.slane %v111_v53, 1 }
 0x1d0   :  { %300 = vrcp.f32 %v101_v51  ;;  %v235_v56 = vsel %vm232_vm7, %v167_v32, %v226_v38  ;;  %v236_v57 = vsel %vm232_vm7, %v168_v49, %v227_v40 }
 0x1d1   :  { %v107_v58 = vadd.f32 %v106_v54, %v105_v52  ;;  %v113_v5 = vadd.f32 %v112_v55, %v111_v53  ;;  %239 = vst [vmem:[%s468_s2 + $0x30] sm:$0x7f] %v235_v56  ;;  %240 = vst [vmem:[%s468_s2 + $0x38] sm:$0x7f] %v236_v57 }
 0x1d3   :  { %302 = vrcp.f32 %v107_v58 }
 0x1d4   :  { %304 = vrcp.f32 %v113_v5 }
 0x1d9   :  { %v299_v46 = vpop.eup %298 }
 0x1da   :  { %v301_v48 = vpop.eup %300  ;;  %v118_v6 = vmul.f32 %v299_v46, %v420_v63 }
 0x1db   :  { %v119_v59 = vmul.f32 %v301_v48, %v422_v0 }
 0x1dc   :  { %228 = vst [vmem:[%s468_s2] sm:$0xff] %v118_v6 }
 0x1dd   :  { %v303_v9 = vpop.eup %302  ;;  %229 = vst [vmem:[%s468_s2 + $0x8] sm:$0xff] %v119_v59 }
 0x1de   :  { %v305_v10 = vpop.eup %304  ;;  %v120_v60 = vmul.f32 %v303_v9, %v88_v16 }
 0x1df   :  { %v121_v61 = vmul.f32 %v305_v10, %v89_v17 }
 0x1e0   :  { %230 = vst [vmem:[%s468_s2 + $0x20] sm:$0xff] %v120_v60 }
 0x1e1   :  { %231 = vst [vmem:[%s468_s2 + $0x28] sm:$0xff] %v121_v61 }

</bundles_post_ra>
